<compile_context>
chip_gen: v6e
topology: v6e:2x2x1
jax: 0.10.0
libtpu: 0.0.40
codegen_flags: <defaults>
</compile_context>

<pallas_src>
import jax
import jax.numpy as jnp
from jax.experimental import pallas as pl
from jax.experimental.pallas import tpu as pltpu


def _round_up(x, m):
    return (x + m - 1) // m * m


# ---------------------------------------------------------------------------
# Kernels
# ---------------------------------------------------------------------------

def _agg_then_transform_kernel(adj_ref, x_ref, w_ref, b_ref, o_ref, acc_ref):
    """out_tile = (sum_k Ahat[i,k] @ X[k]) @ W + b   (used when F <= H)."""
    k = pl.program_id(1)

    @pl.when(k == 0)
    def _():
        acc_ref[...] = jnp.zeros_like(acc_ref)

    # bf16 x bf16 -> f32 accumulate on the MXU (hot loop: pure matmul).
    acc_ref[...] += jnp.dot(adj_ref[...], x_ref[...],
                            preferred_element_type=jnp.float32)

    @pl.when(k == pl.num_programs(1) - 1)
    def _():
        # Small f32 epilogue matmul + bias, once per output row tile.
        o_ref[...] = (
            jnp.dot(acc_ref[...], w_ref[...],
                    preferred_element_type=jnp.float32)
            + b_ref[...]
        ).astype(o_ref.dtype)


def _transform_kernel(x_ref, w_ref, h_ref):
    """H_tile = X_tile @ W   (row-tiled, run once; used when F > H)."""
    h_ref[...] = jnp.dot(x_ref[...], w_ref[...],
                         preferred_element_type=jnp.float32).astype(h_ref.dtype)


def _agg_bias_kernel(adj_ref, h_ref, b_ref, o_ref, acc_ref):
    """out_tile = (sum_k Ahat[i,k] @ H[k]) + b       (used when F > H)."""
    k = pl.program_id(1)

    @pl.when(k == 0)
    def _():
        acc_ref[...] = jnp.zeros_like(acc_ref)

    acc_ref[...] += jnp.dot(adj_ref[...], h_ref[...],
                            preferred_element_type=jnp.float32)

    @pl.when(k == pl.num_programs(1) - 1)
    def _():
        o_ref[...] = (acc_ref[...] + b_ref[...]).astype(o_ref.dtype)


# ---------------------------------------------------------------------------
# Wrapper
# ---------------------------------------------------------------------------

def gcn_forward(adj, x, w, b, *, max_tile=256):
    """out = adj @ (x @ w) + b via Pallas TPU kernels.

    adj: [N, N] f32 normalized adjacency, x: [N, F] f32, w: [F, H] f32,
    b: [H] f32.  Returns [N, H] f32.
    """
    n = adj.shape[0]
    f = x.shape[1]
    h = w.shape[1]

    # Node-dim tile: multiple of 128 (v5e MXU) / up to 256 (v6e/v7x), clamped
    # so tiny graphs don't over-pad.  Feature dims padded to the 128-lane
    # width for dense vector stores and full MXU columns.
    tile = min(max_tile, _round_up(n, 128))
    npad = _round_up(n, tile)
    fp = _round_up(f, 128)
    hp = _round_up(h, 128)

    adj_p = jnp.pad(adj.astype(jnp.bfloat16), ((0, npad - n), (0, npad - n)))
    b_p = jnp.pad(b.astype(jnp.float32).reshape(1, h), ((0, 0), (0, hp - h)))

    grid = (npad // tile, npad // tile)
    dimsem = ("parallel", "arbitrary")  # rows across cores, reduction serial

    if f <= h:
        # Aggregate first: the N^2 matmul contracts F (the smaller dim).
        x_p = jnp.pad(x.astype(jnp.bfloat16), ((0, npad - n), (0, fp - f)))
        w_p = jnp.pad(w.astype(jnp.float32), ((0, fp - f), (0, hp - h)))
        out = pl.pallas_call(
            _agg_then_transform_kernel,
            out_shape=jax.ShapeDtypeStruct((npad, hp), jnp.float32),
            grid_spec=pltpu.PrefetchScalarGridSpec(
                num_scalar_prefetch=0,
                grid=grid,
                in_specs=[
                    pl.BlockSpec((tile, tile), lambda i, k: (i, k)),  # Ahat
                    pl.BlockSpec((tile, fp), lambda i, k: (k, 0)),    # X
                    pl.BlockSpec((fp, hp), lambda i, k: (0, 0)),      # W
                    pl.BlockSpec((1, hp), lambda i, k: (0, 0)),       # bias
                ],
                out_specs=pl.BlockSpec((tile, hp), lambda i, k: (i, 0)),
                scratch_shapes=[pltpu.VMEM((tile, fp), jnp.float32)],
            ),
            compiler_params=pltpu.CompilerParams(dimension_semantics=dimsem),
        )(adj_p, x_p, w_p, b_p)
    else:
        # Transform first (F > H): H = X @ W once (row-tiled), then aggregate.
        x_p = jnp.pad(x.astype(jnp.bfloat16), ((0, npad - n), (0, fp - f)))
        w_p = jnp.pad(w.astype(jnp.bfloat16), ((0, fp - f), (0, hp - h)))
        h_p = pl.pallas_call(
            _transform_kernel,
            out_shape=jax.ShapeDtypeStruct((npad, hp), jnp.bfloat16),
            grid_spec=pltpu.PrefetchScalarGridSpec(
                num_scalar_prefetch=0,
                grid=(npad // tile,),
                in_specs=[
                    pl.BlockSpec((tile, fp), lambda i: (i, 0)),
                    pl.BlockSpec((fp, hp), lambda i: (0, 0)),
                ],
                out_specs=pl.BlockSpec((tile, hp), lambda i: (i, 0)),
            ),
            compiler_params=pltpu.CompilerParams(
                dimension_semantics=("parallel",)),
        )(x_p, w_p)
        out = pl.pallas_call(
            _agg_bias_kernel,
            out_shape=jax.ShapeDtypeStruct((npad, hp), jnp.float32),
            grid_spec=pltpu.PrefetchScalarGridSpec(
                num_scalar_prefetch=0,
                grid=grid,
                in_specs=[
                    pl.BlockSpec((tile, tile), lambda i, k: (i, k)),  # Ahat
                    pl.BlockSpec((tile, hp), lambda i, k: (k, 0)),    # X @ W
                    pl.BlockSpec((1, hp), lambda i, k: (0, 0)),       # bias
                ],
                out_specs=pl.BlockSpec((tile, hp), lambda i, k: (i, 0)),
                scratch_shapes=[pltpu.VMEM((tile, hp), jnp.float32)],
            ),
            compiler_params=pltpu.CompilerParams(dimension_semantics=dimsem),
        )(adj_p, h_p, b_p)

    return out[:n, :h]


# ---------------------------------------------------------------------------
# Glue: dense normalized adjacency from edge_index (plain JAX)
# ---------------------------------------------------------------------------

def build_normalized_adjacency(edge_index, num_nodes):
    """Dense Ahat = D^{-1/2} (A + I) D^{-1/2}, matching PyG GCNConv defaults."""
    src = edge_index[0]
    dst = edge_index[1]
    loops = jnp.arange(num_nodes, dtype=edge_index.dtype)
    src = jnp.concatenate([src, loops])
    dst = jnp.concatenate([dst, loops])
    a = jnp.zeros((num_nodes, num_nodes), jnp.float32)
    # scatter-ADD so parallel edges accumulate (PyG message-passing semantics)
    a = a.at[dst, src].add(1.0)
    deg = a.sum(axis=1)  # in-degree incl. self-loop
    dinv = jnp.where(deg > 0, 1.0 / jnp.sqrt(deg), 0.0)
    return dinv[:, None] * a * dinv[None, :]


if __name__ == "__main__":
    N, NFEAT, NHID = 16, 16, 32

    key = jax.random.PRNGKey(0)
    kx, kw, kx2, kw2 = jax.random.split(key, 4)

    # node features
    x = jax.random.normal(kx, (N, NFEAT), dtype=jnp.float32)

    # deterministic small graph: ring + a few chords (no dup edges, no loops)
    ring_src = jnp.arange(N, dtype=jnp.int32)
    ring_dst = (ring_src + 1) % N
    extra_src = jnp.array([0, 3, 7, 12, 5, 9], dtype=jnp.int32)
    extra_dst = jnp.array([5, 9, 2, 4, 11, 14], dtype=jnp.int32)
    edge_index = jnp.stack([
        jnp.concatenate([ring_src, extra_src]),
        jnp.concatenate([ring_dst, extra_dst]),
    ])

    # GCNConv parameters: glorot-style weight [nfeat, nhid], zero bias [nhid]
    limit = float(jnp.sqrt(6.0 / (NFEAT + NHID)))
    w = jax.random.uniform(kw, (NFEAT, NHID), jnp.float32, -limit, limit)
    b = jnp.zeros((NHID,), jnp.float32)

    adj = build_normalized_adjacency(edge_index, N)

    HI = jax.lax.Precision.HIGHEST
    adj_r = adj.astype(jnp.bfloat16).astype(jnp.float32)

    # --- path 1: F <= H (aggregate-first, W applied in finalize) ----------
    out = jax.block_until_ready(gcn_forward(adj, x, w, b))
    assert out.shape == (N, NHID)

    x_r = x.astype(jnp.bfloat16).astype(jnp.float32)
    ref = jnp.dot(jnp.dot(adj_r, x_r, precision=HI), w, precision=HI) + b[None, :]
    err1 = float(jnp.max(jnp.abs(out - ref)))
    assert jnp.allclose(out, ref, atol=2e-2, rtol=2e-2), err1

    # --- path 2: F > H (transform-first, aggregation + bias) --------------
    F2, H2 = 32, 16
    x2 = jax.random.normal(kx2, (N, F2), dtype=jnp.float32)
    limit2 = float(jnp.sqrt(6.0 / (F2 + H2)))
    w2 = jax.random.uniform(kw2, (F2, H2), jnp.float32, -limit2, limit2)
    b2 = jnp.zeros((H2,), jnp.float32)

    out2 = jax.block_until_ready(gcn_forward(adj, x2, w2, b2))
    assert out2.shape == (N, H2)

    x2_r = x2.astype(jnp.bfloat16).astype(jnp.float32)
    w2_r = w2.astype(jnp.bfloat16).astype(jnp.float32)
    h_r = jnp.dot(x2_r, w2_r, precision=HI)
    h_r = h_r.astype(jnp.bfloat16).astype(jnp.float32)  # kernel keeps H in bf16
    ref2 = jnp.dot(adj_r, h_r, precision=HI) + b2[None, :]
    err2 = float(jnp.max(jnp.abs(out2 - ref2)))
    assert jnp.allclose(out2, ref2, atol=2e-2, rtol=2e-2), err2

    print("KERNEL_OK")
</pallas_src>

<mosaic_0001>
module attributes {stable_mosaic.version = 11 : i64} {
  func.func @_agg_then_transform_kernel(%arg0: i32, %arg1: i32, %arg2: memref<128x128xbf16, #tpu.memory_space<vmem>>, %arg3: memref<128x128xbf16, #tpu.memory_space<vmem>>, %arg4: memref<128x128xf32, #tpu.memory_space<vmem>>, %arg5: memref<1x128xf32, #tpu.memory_space<vmem>>, %arg6: memref<128x128xf32, #tpu.memory_space<vmem>>, %arg7: memref<128x128xf32, #tpu.memory_space<vmem>>) attributes {dimension_semantics = [#tpu.dimension_semantics<parallel>, #tpu.dimension_semantics<arbitrary>], iteration_bounds = array<i64: 1, 1>, scalar_prefetch = 0 : i64, scratch_operands = 1 : i64, tpu.core_type = #tpu.core_type<tc>, window_params = [{transform_indices = @transform_0, window_bounds = array<i64: 128, 128>}, {transform_indices = @transform_1, window_bounds = array<i64: 128, 128>}, {pipeline_mode = #tpu.pipeline_mode<synchronous>, transform_indices = @transform_2, window_bounds = array<i64: 128, 128>}, {pipeline_mode = #tpu.pipeline_mode<synchronous>, transform_indices = @transform_3, window_bounds = array<i64: 1, 128>}, {transform_indices = @transform_4, window_bounds = array<i64: 128, 128>}]} {
    %c0_i32 = arith.constant 0 : i32
    %0 = arith.cmpi eq, %arg1, %c0_i32 : i32
    %1 = arith.extui %0 : i1 to i32
    %c0_i32_0 = arith.constant 0 : i32
    %2 = arith.cmpi ne, %1, %c0_i32_0 : i32
    scf.if %2 {
      %cst_10 = arith.constant 0.000000e+00 : f32
      %12 = vector.broadcast %cst_10 : f32 to vector<128x128xf32>
      %c0_11 = arith.constant 0 : index
      %c0_12 = arith.constant 0 : index
      %13 = vector.load %arg7[%c0_11, %c0_12] : memref<128x128xf32, #tpu.memory_space<vmem>>, vector<128x128xf32>
      tpu.vector_store %arg7[%c0_11, %c0_12], %12 {strides = array<i32>} : memref<128x128xf32, #tpu.memory_space<vmem>>, vector<128x128xf32>,
    } else {
    }
    %c0 = arith.constant 0 : index
    %c0_1 = arith.constant 0 : index
    %3 = vector.load %arg7[%c0, %c0_1] : memref<128x128xf32, #tpu.memory_space<vmem>>, vector<128x128xf32>
    %c0_2 = arith.constant 0 : index
    %c0_3 = arith.constant 0 : index
    %4 = vector.load %arg2[%c0_2, %c0_3] : memref<128x128xbf16, #tpu.memory_space<vmem>>, vector<128x128xbf16>
    %c0_4 = arith.constant 0 : index
    %c0_5 = arith.constant 0 : index
    %5 = vector.load %arg3[%c0_4, %c0_5] : memref<128x128xbf16, #tpu.memory_space<vmem>>, vector<128x128xbf16>
    %cst = arith.constant dense<0.000000e+00> : vector<128x128xf32>
    %6 = tpu.matmul %4, %5, %cst {dimension_numbers = #tpu.dot_dimension_numbers<[1], [0], [0], [1], [0, 0, 1, 1], [], []>} : vector<128x128xbf16>, vector<128x128xbf16>, vector<128x128xf32> -> vector<128x128xf32>
    %7 = arith.addf %3, %6 : vector<128x128xf32>
    %c0_6 = arith.constant 0 : index
    %c0_7 = arith.constant 0 : index
    %8 = vector.load %arg7[%c0_6, %c0_7] : memref<128x128xf32, #tpu.memory_space<vmem>>, vector<128x128xf32>
    tpu.vector_store %arg7[%c0_6, %c0_7], %7 {strides = array<i32>} : memref<128x128xf32, #tpu.memory_space<vmem>>, vector<128x128xf32>,
    %c0_i32_8 = arith.constant 0 : i32
    %9 = arith.cmpi eq, %arg1, %c0_i32_8 : i32
    %10 = arith.extui %9 : i1 to i32
    %c0_i32_9 = arith.constant 0 : i32
    %11 = arith.cmpi ne, %10, %c0_i32_9 : i32
    scf.if %11 {
      %c0_10 = arith.constant 0 : index
      %c0_11 = arith.constant 0 : index
      %12 = vector.load %arg7[%c0_10, %c0_11] : memref<128x128xf32, #tpu.memory_space<vmem>>, vector<128x128xf32>
      %c0_12 = arith.constant 0 : index
      %c0_13 = arith.constant 0 : index
      %13 = vector.load %arg4[%c0_12, %c0_13] : memref<128x128xf32, #tpu.memory_space<vmem>>, vector<128x128xf32>
      %cst_14 = arith.constant dense<0.000000e+00> : vector<128x128xf32>
      %14 = tpu.matmul %12, %13, %cst_14 {dimension_numbers = #tpu.dot_dimension_numbers<[1], [0], [0], [1], [0, 0, 1, 1], [], []>} : vector<128x128xf32>, vector<128x128xf32>, vector<128x128xf32> -> vector<128x128xf32>
      %c0_15 = arith.constant 0 : index
      %c0_16 = arith.constant 0 : index
      %15 = vector.load %arg5[%c0_15, %c0_16] : memref<1x128xf32, #tpu.memory_space<vmem>>, vector<1x128xf32>
      %16 = vector.broadcast %15 : vector<1x128xf32> to vector<128x128xf32>
      %17 = arith.addf %14, %16 : vector<128x128xf32>
      %c0_17 = arith.constant 0 : index
      %c0_18 = arith.constant 0 : index
      %18 = vector.load %arg6[%c0_17, %c0_18] : memref<128x128xf32, #tpu.memory_space<vmem>>, vector<128x128xf32>
      tpu.vector_store %arg6[%c0_17, %c0_18], %17 {strides = array<i32>} : memref<128x128xf32, #tpu.memory_space<vmem>>, vector<128x128xf32>,
    } else {
    }
    return
  }
  func.func @transform_0(%arg0: i32, %arg1: i32) -> (i32, i32) {
    %c0_i32 = arith.constant 0 : i32
    return %arg0, %arg1 : i32, i32
  }
  func.func @transform_1(%arg0: i32, %arg1: i32) -> (i32, i32) {
    %c0_i32 = arith.constant 0 : i32
    %c0_i32_0 = arith.constant 0 : i32
    return %arg1, %c0_i32 : i32, i32
  }
  func.func @transform_2(%arg0: i32, %arg1: i32) -> (i32, i32) {
    %c0_i32 = arith.constant 0 : i32
    %c0_i32_0 = arith.constant 0 : i32
    %c0_i32_1 = arith.constant 0 : i32
    return %c0_i32, %c0_i32_0 : i32, i32
  }
  func.func @transform_3(%arg0: i32, %arg1: i32) -> (i32, i32) {
    %c0_i32 = arith.constant 0 : i32
    %c0_i32_0 = arith.constant 0 : i32
    %c0_i32_1 = arith.constant 0 : i32
    return %c0_i32, %c0_i32_0 : i32, i32
  }
  func.func @transform_4(%arg0: i32, %arg1: i32) -> (i32, i32) {
    %c0_i32 = arith.constant 0 : i32
    %c0_i32_0 = arith.constant 0 : i32
    return %arg0, %c0_i32 : i32, i32
  }
}

</mosaic_0001>

<bundles_post_ra>
// kernel: tpu_custom_call.1
= control target key start
LH: loop header
LB: loop body
LE: loop exit
PB: predicated region body
PF: predicated region fallthrough
CT: control target
= control target key end

     0   :  { %9 = vsyncpa [#allocation4], 0  ;;  %s891_s0 = inlined_call_operand.hbm [shape: bf16[128,128], index: 0, kind: input, shape index: {}]   ;;  %s892_s1 = inlined_call_operand.hbm [shape: bf16[128,128], index: 1, kind: input, shape index: {}]   ;;  %s893_s2 = inlined_call_operand.hbm [shape: f32[128,128], index: 2, kind: input, shape index: {}]   ;;  %s894_s3 = inlined_call_operand.vmem [shape: f32[1,128], index: 3, kind: input, shape index: {}]   ;;  %s895_s4 = inlined_call_operand.hbm [shape: f32[128,128], index: 4, kind: output, shape index: {}]  }
   0x1   :  { %10 = vsyncpa [#allocation7], 0 }
   0x2   :  { %11 = vsyncpa [#allocation5], 0  ;;  %s837_s15 = smov [#allocation6]   ;;  %s838_s17 = smov [#allocation3]  }
   0x3   :  { %s29_s16 = sshll.u32 %s837_s15, 4  ;;  %s17_s18 = sshll.u32 %s838_s17, 4  ;;  %s30_s16 = int_to_ptr.vmem [resolvable:$true] %s29_s16  ;;  %s18_s18 = int_to_ptr.vmem [resolvable:$true] %s17_s18 }
   0x4   :  { %s759_s19 = scalar_lea.vmem %s30_s16, 1024  ;;  %p764_p1 = scmp.lt.s32.totalorder %s30_s16, %s30_s16 }
   0x5   :  { %p760_p0 = scmp.ne.s32.totalorder %s30_s16, %s759_s19  ;;  %p765_p2 = scmp.lt.s32.totalorder %s759_s19, %s759_s19 }
   0x7   :  { %p766_p3 = por %p765_p2, %p764_p1 }
   0x9   :  { %p767_p4 = pnand %p766_p3, %p760_p0 }
   0xb   :  { %770 = shalt.err (!%p767_p4)
}
   0xc   :  { %s839_s20 = smov 64   ;;  %s840_s21 = smov 4  }
   0xd   :  { %35 = dma.hbm_to_vmem [thread:$0]  %s892_s1, 1024, %s30_s16, [#allocation7], %s839_s20, %s839_s20, %s840_s21  }
   0xe   :  { %s779_s24 = scalar_lea.vmem %s18_s18, 1024  ;;  %p784_p6 = scmp.lt.s32.totalorder %s18_s18, %s18_s18 }
   0xf   :  { %p780_p5 = scmp.ne.s32.totalorder %s18_s18, %s779_s24  ;;  %p785_p7 = scmp.lt.s32.totalorder %s779_s24, %s779_s24 }
  0x11   :  { %p786_p8 = por %p785_p7, %p784_p6 }
  0x13   :  { %p787_p9 = pnand %p786_p8, %p780_p5 }
  0x15   :  { %790 = shalt.err (!%p787_p9)
}
  0x16   :  { %23 = dma.hbm_to_vmem [thread:$0]  %s891_s0, 1024, %s18_s18, [#allocation4], %s839_s20, %s839_s20, %s840_s21  }
  0x17   :  { %s841_s27 = smov [#allocation8]  }
  0x18   :  { %s41_s28 = sshll.u32 %s841_s27, 4  ;;  %s42_s28 = int_to_ptr.vmem [resolvable:$true] %s41_s28 }
  0x19   :  { %s799_s29 = scalar_lea.vmem %s42_s28, 2048  ;;  %p804_p11 = scmp.lt.s32.totalorder %s42_s28, %s42_s28 }
  0x1a   :  { %p800_p10 = scmp.ne.s32.totalorder %s42_s28, %s799_s29  ;;  %p805_p12 = scmp.lt.s32.totalorder %s799_s29, %s799_s29 }
  0x1c   :  { %p806_p13 = por %p805_p12, %p804_p11 }
  0x1e   :  { %p807_p0 = pnand %p806_p13, %p800_p10 }
  0x20   :  { %810 = shalt.err (!%p807_p0)
}
  0x21   :  { %s842_s1 = smov 128   ;;  %s843_s30 = smov 8  }
  0x22   :  { %47 = dma.hbm_to_vmem [thread:$0]  %s893_s2, 2048, %s42_s28, [#allocation7], %s842_s1, %s842_s1, %s843_s30  }
  0x23   :  { %831 = dma.done.wait [#allocation4], 1024  }
  0x24   :  { %832 = vsyncadd [#allocation4], 4294966272 }
  0x25   :  { %833 = dma.done.wait [#allocation7], 3072  }
  0x26   :  { %834 = vsyncadd [#allocation7], 4294964224  ;;  %v735_v0 = vld [vmem:[#allocation6 + $0x38] sm:$0xff]   ;;  %v736_v1 = vld [vmem:[#allocation6 + $0x30] sm:$0xff]  }
  0x27   :  { %639 = vmatprep.subr.bf16.mxu0 %v735_v0  ;;  %v737_v2 = vld [vmem:[#allocation6 + $0x28] sm:$0xff]   ;;  %v738_v3 = vld [vmem:[#allocation6 + $0x20] sm:$0xff]   ;;  %v739_v5 = vld [vmem:[#allocation6 + $0x18] sm:$0xff]  }
  0x28   :  { %640 = vmatpush3.bf16.msra.mxu0 %v735_v0  ;;  %v743_v4 = vld [vmem:[#allocation3] sm:$0xff]   ;;  %v740_v6 = vld [vmem:[#allocation6 + $0x10] sm:$0xff]   ;;  %v387_v7 = vld [vmem:[#allocation8 + $0x78] sm:$0xff] }
  0x29   :  { %641 = vmatprep.subr.bf16.mxu0 %v736_v1  ;;  %655 = vmatprep.mubr.bf16.mxu0 %v743_v4  ;;  %v386_v8 = vld [vmem:[#allocation8 + $0x70] sm:$0xff]  ;;  %v385_v9 = vld [vmem:[#allocation8 + $0x68] sm:$0xff]  ;;  %v384_v11 = vld [vmem:[#allocation8 + $0x60] sm:$0xff] }
  0x2a   :  { %671 = vmatprep.subr.mxu1 %v387_v7  ;;  %v741_v10 = vld [vmem:[#allocation6 + $0x8] sm:$0xff]   ;;  %v383_v12 = vld [vmem:[#allocation8 + $0x58] sm:$0xff]  ;;  %v742_v13 = vld [vmem:[#allocation6] sm:$0xff]  }
  0x2b   :  { %672 = vmatpush3.msra.mxu1 %v387_v7  ;;  %v382_v14 = vld [vmem:[#allocation8 + $0x50] sm:$0xff]  ;;  %v381_v15 = vld [vmem:[#allocation8 + $0x48] sm:$0xff]  ;;  %v380_v16 = vld [vmem:[#allocation8 + $0x40] sm:$0xff] }
  0x2c   :  { %642 = vmatpush3.bf16.msra.mxu0 %v736_v1  ;;  %673 = vmatprep.subr.mxu1 %v386_v8  ;;  %v744_v17 = vld [vmem:[#allocation3 + $0x8] sm:$0xff]   ;;  %v379_v18 = vld [vmem:[#allocation8 + $0x38] sm:$0xff]  ;;  %v745_v19 = vld [vmem:[#allocation3 + $0x10] sm:$0xff]  }
  0x2d   :  { %643 = vmatprep.subr.bf16.mxu0 %v737_v2  ;;  %674 = vmatpush3.msra.mxu1 %v386_v8  ;;  %v378_v20 = vld [vmem:[#allocation8 + $0x30] sm:$0xff]  ;;  %v377_v21 = vld [vmem:[#allocation8 + $0x28] sm:$0xff]  ;;  %v376_v22 = vld [vmem:[#allocation8 + $0x20] sm:$0xff] }
  0x2e   :  { %675 = vmatprep.subr.mxu1 %v385_v9  ;;  %v746_v23 = vld [vmem:[#allocation3 + $0x18] sm:$0xff]   ;;  %v747_v25 = vld [vmem:[#allocation3 + $0x20] sm:$0xff]   ;;  %v748_v26 = vld [vmem:[#allocation3 + $0x28] sm:$0xff]  }
  0x2f   :  { %676 = vmatpush3.msra.mxu1 %v385_v9  ;;  %v375_v24 = vld [vmem:[#allocation8 + $0x18] sm:$0xff]  ;;  %v749_v27 = vld [vmem:[#allocation3 + $0x30] sm:$0xff]   ;;  %v373_v30 = vld [vmem:[#allocation8 + $0x8] sm:$0xff] }
  0x30   :  { %644 = vmatpush3.bf16.msra.mxu0 %v737_v2  ;;  %677 = vmatprep.subr.mxu1 %v384_v11  ;;  %v750_v28 = vld [vmem:[#allocation3 + $0x38] sm:$0xff]   ;;  %v374_v29 = vld [vmem:[#allocation8 + $0x10] sm:$0xff]  ;;  %v372_v31 = vld [vmem:[#allocation8] sm:$0xff] }
  0x31   :  { %645 = vmatprep.subr.bf16.mxu0 %v738_v3  ;;  %678 = vmatpush3.msra.mxu1 %v384_v11  ;;  %v590_v48 = vld [vmem:[%s894_s3] ss:$0 sm:$0xff]  ;;  %s844_s3 = smov [#allocation9]  }
  0x32   :  { %679 = vmatprep.subr.mxu1 %v383_v12  ;;  %s561_s7 = sshll.u32 %s844_s3, 4  ;;  %s562_s7 = int_to_ptr.vmem [resolvable:$true] %s561_s7 }
  0x33   :  { %680 = vmatpush3.msra.mxu1 %v383_v12  ;;  %s811_s8 = scalar_lea.vmem %s562_s7, 2048  ;;  %p816_p2 = scmp.lt.s32.totalorder %s562_s7, %s562_s7 }
  0x34   :  { %646 = vmatpush3.bf16.msra.mxu0 %v738_v3  ;;  %681 = vmatprep.subr.mxu1 %v382_v14  ;;  %p812_p1 = scmp.ne.s32.totalorder %s562_s7, %s811_s8  ;;  %p817_p3 = scmp.lt.s32.totalorder %s811_s8, %s811_s8 }
  0x35   :  { %647 = vmatprep.subr.bf16.mxu0 %v739_v5  ;;  %682 = vmatpush3.msra.mxu1 %v382_v14 }
  0x36   :  { %683 = vmatprep.subr.mxu1 %v381_v15  ;;  %p818_p4 = por %p817_p3, %p816_p2 }
  0x37   :  { %684 = vmatpush3.msra.mxu1 %v381_v15 }
  0x38   :  { %648 = vmatpush3.bf16.msra.mxu0 %v739_v5  ;;  %685 = vmatprep.subr.mxu1 %v380_v16  ;;  %p819_p5 = pnand %p818_p4, %p812_p1 }
  0x39   :  { %649 = vmatprep.subr.bf16.mxu0 %v740_v6  ;;  %686 = vmatpush3.msra.mxu1 %v380_v16 }
  0x3a   :  { %687 = vmatprep.subr.mxu1 %v379_v18 }
  0x3b   :  { %688 = vmatpush3.msra.mxu1 %v379_v18 }
  0x3c   :  { %650 = vmatpush3.bf16.msra.mxu0 %v740_v6  ;;  %689 = vmatprep.subr.mxu1 %v378_v20 }
  0x3d   :  { %651 = vmatprep.subr.bf16.mxu0 %v741_v10  ;;  %690 = vmatpush3.msra.mxu1 %v378_v20 }
  0x3e   :  { %691 = vmatprep.subr.mxu1 %v377_v21 }
  0x3f   :  { %692 = vmatpush3.msra.mxu1 %v377_v21 }
  0x40   :  { %652 = vmatpush3.bf16.msra.mxu0 %v741_v10  ;;  %693 = vmatprep.subr.mxu1 %v376_v22 }
  0x41   :  { %653 = vmatprep.subr.bf16.mxu0 %v742_v13  ;;  %694 = vmatpush3.msra.mxu1 %v376_v22 }
  0x42   :  { %695 = vmatprep.subr.mxu1 %v375_v24 }
  0x43   :  { %696 = vmatpush3.msra.mxu1 %v375_v24 }
  0x44   :  { %654 = vmatpush3.bf16.msra.mxu0 %v742_v13  ;;  %697 = vmatprep.subr.mxu1 %v374_v29 }
  0x45   :  { %698 = vmatpush3.msra.mxu1 %v374_v29 }
  0x46   :  { %699 = vmatprep.subr.mxu1 %v373_v30 }
  0x47   :  { %656 = vmatmul.mubr.bf16.vlgmr.msra.gmra.mxu0 %v744_v17  ;;  %700 = vmatpush3.msra.mxu1 %v373_v30 }
  0x48   :  { %659 = vmatprep.mubr.bf16.mxu0 %v745_v19  ;;  %701 = vmatprep.subr.mxu1 %v372_v31 }
  0x49   :  { %702 = vmatpush3.msra.mxu1 %v372_v31 }
  0x4f   :  { %660 = vmatmul.mubr.bf16.gmra.mxu0 %v746_v23 }
  0x50   :  { %663 = vmatprep.mubr.bf16.mxu0 %v747_v25 }
  0x57   :  { %664 = vmatmul.mubr.bf16.gmra.mxu0 %v748_v26 }
  0x58   :  { %667 = vmatprep.mubr.bf16.mxu0 %v749_v27 }
  0x5f   :  { %668 = vmatmul.mubr.bf16.gmra.mxu0 %v750_v28 }
 0x107   :  { %v657_v32 = vpop.f32.mrf.mxu0 }
 0x109   :  { %v258_v33 = vpop.f32.mrf.mxu0 }
 0x10a   :  { %703 = vmatprep.mubr.f32.mxu1 %v258_v33 }
 0x10b   :  { %v658_v34 = vpop.f32.mrf.mxu0 }
 0x10d   :  { %v261_v35 = vpop.f32.mrf.mxu0 }
 0x10e   :  { %704 = vmatmul.mubr.f32.vlgmr.msra.gmra.mxu1 %v261_v35 }
 0x10f   :  { %v661_v36 = vpop.f32.mrf.mxu0  ;;  %706 = vmatprep.mubr.f32.mxu1 %v657_v32 }
 0x111   :  { %v274_v37 = vpop.f32.mrf.mxu0 }
 0x112   :  { %707 = vmatmul.mubr.f32.gmra.mxu1 %v658_v34 }
 0x113   :  { %v662_v38 = vpop.f32.mrf.mxu0  ;;  %709 = vmatprep.mubr.f32.mxu1 %v274_v37 }
 0x115   :  { %v277_v39 = vpop.f32.mrf.mxu0 }
 0x116   :  { %710 = vmatmul.mubr.f32.gmra.mxu1 %v277_v39 }
 0x117   :  { %v665_v40 = vpop.f32.mrf.mxu0  ;;  %712 = vmatprep.mubr.f32.mxu1 %v661_v36 }
 0x119   :  { %v290_v41 = vpop.f32.mrf.mxu0 }
 0x11a   :  { %713 = vmatmul.mubr.f32.gmra.mxu1 %v662_v38 }
 0x11b   :  { %v666_v42 = vpop.f32.mrf.mxu0  ;;  %715 = vmatprep.mubr.f32.mxu1 %v290_v41 }
 0x11d   :  { %v293_v43 = vpop.f32.mrf.mxu0 }
 0x11e   :  { %716 = vmatmul.mubr.f32.gmra.mxu1 %v293_v43 }
 0x11f   :  { %v669_v44 = vpop.f32.mrf.mxu0  ;;  %718 = vmatprep.mubr.f32.mxu1 %v665_v40 }
 0x121   :  { %v306_v45 = vpop.f32.mrf.mxu0 }
 0x122   :  { %719 = vmatmul.mubr.f32.gmra.mxu1 %v666_v42 }
 0x123   :  { %v670_v46 = vpop.f32.mrf.mxu0  ;;  %721 = vmatprep.mubr.f32.mxu1 %v306_v45 }
 0x125   :  { %v309_v47 = vpop.f32.mrf.mxu0 }
 0x126   :  { %722 = vmatmul.mubr.f32.gmra.mxu1 %v309_v47 }
 0x127   :  { %724 = vmatprep.mubr.f32.mxu1 %v669_v44 }
 0x12a   :  { %725 = vmatmul.mubr.f32.gmra.mxu1 %v670_v46 }
 0x1ce   :  { %v705_v49 = vpop.f32.mrf.mxu1 }
 0x1cf   :  { %v467_v50 = vadd.f32 %v705_v49, %v590_v48 }
 0x1d0   :  { %v461_v51 = vpop.f32.mrf.mxu1 }
 0x1d1   :  { %541 = vst [vmem:[#allocation9 + $0x8] sm:$0xff] %v467_v50  ;;  %v462_v52 = vadd.f32 %v590_v48, %v461_v51 }
 0x1d2   :  { %v708_v53 = vpop.f32.mrf.mxu1 }
 0x1d3   :  { %540 = vst [vmem:[#allocation9] sm:$0xff] %v462_v52  ;;  %v477_v54 = vadd.f32 %v708_v53, %v590_v48 }
 0x1d4   :  { %v471_v55 = vpop.f32.mrf.mxu1 }
 0x1d5   :  { %543 = vst [vmem:[#allocation9 + $0x18] sm:$0xff] %v477_v54  ;;  %v472_v56 = vadd.f32 %v590_v48, %v471_v55 }
 0x1d6   :  { %v711_v57 = vpop.f32.mrf.mxu1 }
 0x1d7   :  { %542 = vst [vmem:[#allocation9 + $0x10] sm:$0xff] %v472_v56  ;;  %v487_v58 = vadd.f32 %v711_v57, %v590_v48 }
 0x1d8   :  { %v481_v59 = vpop.f32.mrf.mxu1 }
 0x1d9   :  { %545 = vst [vmem:[#allocation9 + $0x28] sm:$0xff] %v487_v58  ;;  %v482_v60 = vadd.f32 %v590_v48, %v481_v59 }
 0x1da   :  { %v714_v61 = vpop.f32.mrf.mxu1 }
 0x1db   :  { %544 = vst [vmem:[#allocation9 + $0x20] sm:$0xff] %v482_v60  ;;  %v497_v62 = vadd.f32 %v714_v61, %v590_v48 }
 0x1dc   :  { %v491_v63 = vpop.f32.mrf.mxu1 }
 0x1dd   :  { %547 = vst [vmem:[#allocation9 + $0x38] sm:$0xff] %v497_v62  ;;  %v492_v0 = vadd.f32 %v590_v48, %v491_v63 }
 0x1de   :  { %v717_v1 = vpop.f32.mrf.mxu1 }
 0x1df   :  { %546 = vst [vmem:[#allocation9 + $0x30] sm:$0xff] %v492_v0  ;;  %v507_v2 = vadd.f32 %v717_v1, %v590_v48 }
 0x1e0   :  { %v501_v3 = vpop.f32.mrf.mxu1 }
 0x1e1   :  { %549 = vst [vmem:[#allocation9 + $0x48] sm:$0xff] %v507_v2  ;;  %v502_v4 = vadd.f32 %v590_v48, %v501_v3 }
 0x1e2   :  { %v720_v5 = vpop.f32.mrf.mxu1 }
 0x1e3   :  { %548 = vst [vmem:[#allocation9 + $0x40] sm:$0xff] %v502_v4  ;;  %v517_v6 = vadd.f32 %v720_v5, %v590_v48 }
 0x1e4   :  { %v511_v7 = vpop.f32.mrf.mxu1 }
 0x1e5   :  { %551 = vst [vmem:[#allocation9 + $0x58] sm:$0xff] %v517_v6  ;;  %v512_v8 = vadd.f32 %v590_v48, %v511_v7 }
 0x1e6   :  { %v723_v9 = vpop.f32.mrf.mxu1 }
 0x1e7   :  { %550 = vst [vmem:[#allocation9 + $0x50] sm:$0xff] %v512_v8  ;;  %v527_v10 = vadd.f32 %v723_v9, %v590_v48 }
 0x1e8   :  { %v521_v11 = vpop.f32.mrf.mxu1 }
 0x1e9   :  { %553 = vst [vmem:[#allocation9 + $0x68] sm:$0xff] %v527_v10  ;;  %v522_v12 = vadd.f32 %v590_v48, %v521_v11 }
 0x1ea   :  { %v726_v13 = vpop.f32.mrf.mxu1 }
 0x1eb   :  { %552 = vst [vmem:[#allocation9 + $0x60] sm:$0xff] %v522_v12  ;;  %v537_v14 = vadd.f32 %v726_v13, %v590_v48 }
 0x1ec   :  { %v531_v15 = vpop.f32.mrf.mxu1 }
 0x1ed   :  { %555 = vst [vmem:[#allocation9 + $0x78] sm:$0xff] %v537_v14  ;;  %v532_v16 = vadd.f32 %v590_v48, %v531_v15 }
 0x1ef   :  { %554 = vst [vmem:[#allocation9 + $0x70] sm:$0xff] %v532_v16 }
 0x1f0   :  { %822 = shalt.err (!%p819_p5)
}
 0x1f1   :  { %567 = dma.vmem_to_hbm [thread:$0]  %s562_s7, 2048, %s895_s4, [#allocation5], %s842_s1, %s842_s1, %s843_s30  }
 0x1f2   :  { %835 = dma.done.wait [#allocation5], 2048  }
 0x1f3   :  { %836 = vsyncadd [#allocation5], 4294965248 }
 0x1f4   :  { %571 = vsyncpa [#allocation4], 1 }
 0x1f5   :  { %572 = vsyncpa [#allocation7], 1 }
 0x1f6   :  { %573 = vsyncpa [#allocation5], 1 }

</bundles_post_ra>
